<compile_context>
chip_gen: v7x
topology: tpu7x:2x2x1
jax: 0.10.0
libtpu: 0.0.40
codegen_flags: <defaults>
</compile_context>

<pallas_src>
import functools

import jax
import jax.numpy as jnp
from jax.experimental import pallas as pl
from jax.experimental.pallas import tpu as pltpu

HIDDEN = 128
MAX_TB = 4096          # VMEM-safe batch-tile cap (v7x: 64 MiB physical / 32 MiB scoped)


def _round_up(n, m):
    return ((n + m - 1) // m) * m


def _cdiv(a, b):
    return -(-a // b)


def _dueling_dqn_kernel(
    x_ref,        # [TB, S]       bf16
    w1_ref,       # [S, 128]      bf16
    b1_ref,       # [1, 128]      f32
    wh_ref,       # [128, 256]    bf16   (wv1 | wa1 fused)
    bh_ref,       # [1, 256]      f32    (bv1 | ba1 fused)
    wq_ref,       # [256, A]      bf16   (dueling combine folded in)
    bq_ref,       # [1, A]        f32
    q_ref,        # [TB, A]       f32
):
    # feature = ReLU(x @ W1 + b1)   (bf16 operands -> MXU fast path, f32 accumulation)
    h = jnp.dot(x_ref[...], w1_ref[...],
                preferred_element_type=jnp.float32) + b1_ref[...]
    h = jnp.maximum(h, 0.0)

    # fused value/advantage hidden layers: one 256-lane-wide matmul
    hva = jnp.dot(h.astype(wh_ref.dtype), wh_ref[...],
                  preferred_element_type=jnp.float32) + bh_ref[...]
    hva = jnp.maximum(hva, 0.0)

    # fused head outputs + dueling combine:
    #   q[:, j] = hv@wv2 + bv2 + ha@wa2[:, j] + ba2[j] - mean_j(ha@wa2 + ba2)
    # is exactly hva @ wq + bq with wq/bq built in prepare_params.
    # K=256 fills the 256-wide MXU on v6e/v7x; no XLU reductions needed.
    q = jnp.dot(hva.astype(wq_ref.dtype), wq_ref[...],
                preferred_element_type=jnp.float32) + bq_ref[...]
    q_ref[...] = q.astype(q_ref.dtype)


def prepare_params(p, action_dim):
    """Convert f32 (in, out)-layout params into the fused bf16 kernel layout.

    The dueling combine  value + (adv - adv.mean())  is folded into a single
    output projection:
        wq[:128, j] = wv2                      (value, broadcast over actions)
        wq[128:, j] = wa2[:, j] - mean_k wa2[:, k]
        bq[j]       = ba2[j] - mean_k ba2[k] + bv2
    """
    wv2_col = p["wv2"].reshape(HIDDEN, 1)                                  # [128, 1]
    wq_val = jnp.broadcast_to(wv2_col, (HIDDEN, action_dim))               # [128, A]
    wq_adv = p["wa2"] - jnp.mean(p["wa2"], axis=1, keepdims=True)          # [128, A]
    wq = jnp.concatenate([wq_val, wq_adv], axis=0)                         # [256, A]
    bq = p["ba2"] - jnp.mean(p["ba2"], axis=1, keepdims=True) + p["bv2"]   # [1, A]
    return dict(
        w1=p["w1"].astype(jnp.bfloat16),
        b1=p["b1"],
        wh=jnp.concatenate([p["wv1"], p["wa1"]], axis=1).astype(jnp.bfloat16),  # [128,256]
        bh=jnp.concatenate([p["bv1"], p["ba1"]], axis=1),                       # [1,256]
        wq=wq.astype(jnp.bfloat16),
        bq=bq,
    )


def dueling_dqn_forward(x, kp, *, action_dim, block_b=2048):
    """x: [B, state_dim].  kp: kernel-ready params from prepare_params()."""
    B, S = x.shape
    A = action_dim

    # cast states to bf16 once (halves x HBM read; same numerics as an in-kernel cast)
    x = x.astype(jnp.bfloat16)

    # batch tile: biggest multiple of 8 that fits the VMEM cap, single step if possible
    B8 = _round_up(B, 8)
    TB = min(_round_up(min(block_b, B8), 8), MAX_TB)
    nb = _cdiv(B8, TB)
    # v7x megacore: with >1 tile, prefer an even step count so both TCs get work
    if nb > 1 and nb % 2 == 1:
        nb += 1
        TB = _round_up(_cdiv(B8, nb), 8)
        nb = _cdiv(B8, TB)
    B_pad = nb * TB
    if B_pad != B:
        x = jnp.pad(x, ((0, B_pad - B), (0, 0)))

    const = lambda i: (0, 0)  # weights: same block every step -> stay VMEM-resident
    in_specs = [
        pl.BlockSpec((TB, S), lambda i: (i, 0)),          # x (streamed over batch)
        pl.BlockSpec((S, HIDDEN), const),                 # w1
        pl.BlockSpec((1, HIDDEN), const),                 # b1
        pl.BlockSpec((HIDDEN, 2 * HIDDEN), const),        # wh
        pl.BlockSpec((1, 2 * HIDDEN), const),             # bh
        pl.BlockSpec((2 * HIDDEN, A), const),             # wq (dueling combine folded in)
        pl.BlockSpec((1, A), const),                      # bq
    ]
    # narrow (real-width) output: masked vst, but 16x fewer HBM write bytes than a
    # 128-lane-padded slab, and no post-kernel column slice.
    out_spec = pl.BlockSpec((TB, A), lambda i: (i, 0))

    args = (x, kp["w1"], kp["b1"], kp["wh"], kp["bh"], kp["wq"], kp["bq"])

    flops = 2 * B_pad * (S * HIDDEN + HIDDEN * 2 * HIDDEN + 2 * HIDDEN * A)
    bytes_accessed = (B_pad * S * 2                       # x read (bf16)
                      + B_pad * A * 4                     # q write (f32, real width)
                      + sum(int(a.size) * a.dtype.itemsize for a in args[1:]))

    q = pl.pallas_call(
        _dueling_dqn_kernel,
        out_shape=jax.ShapeDtypeStruct((B_pad, A), jnp.float32),
        grid=(nb,),
        in_specs=in_specs,
        out_specs=out_spec,
        compiler_params=pltpu.CompilerParams(
            dimension_semantics=("parallel",)),
        cost_estimate=pl.CostEstimate(
            flops=flops, transcendentals=0, bytes_accessed=bytes_accessed),
    )(*args)

    if B_pad != B:          # only pay a slice if the batch needed sublane padding
        q = q[:B]
    return q


def init_params(key, state_dim, action_dim):
    """Deterministic PyTorch-Linear-style uniform init, stored as (in, out)."""
    def linear(k, fan_in, fan_out):
        kw, kb = jax.random.split(k)
        bound = 1.0 / jnp.sqrt(fan_in)
        w = jax.random.uniform(kw, (fan_in, fan_out), jnp.float32, -bound, bound)
        b = jax.random.uniform(kb, (1, fan_out), jnp.float32, -bound, bound)
        return w, b

    k1, k2, k3, k4, k5 = jax.random.split(key, 5)
    w1, b1 = linear(k1, state_dim, HIDDEN)
    wv1, bv1 = linear(k2, HIDDEN, HIDDEN)
    wv2, bv2 = linear(k3, HIDDEN, 1)
    wa1, ba1 = linear(k4, HIDDEN, HIDDEN)
    wa2, ba2 = linear(k5, HIDDEN, action_dim)
    return dict(w1=w1, b1=b1, wv1=wv1, bv1=bv1, wv2=wv2, bv2=bv2,
                wa1=wa1, ba1=ba1, wa2=wa2, ba2=ba2)


def reference_forward(x, p):
    h = jax.nn.relu(x @ p["w1"] + p["b1"])
    v = jax.nn.relu(h @ p["wv1"] + p["bv1"]) @ p["wv2"] + p["bv2"]
    a = jax.nn.relu(h @ p["wa1"] + p["ba1"]) @ p["wa2"] + p["ba2"]
    return v + (a - a.mean(axis=1, keepdims=True))


# TODO(synk): DuelingDQN.act() (epsilon-greedy sampling + argmax) is host-side
# policy control flow, not part of the forward pass, so it is not kernelized.

if __name__ == "__main__":
    state_dim = 16
    action_dim = 8
    batch = 256          # realistic DQN replay batch; single grid step (TB=256, nb=1)

    key = jax.random.PRNGKey(0)
    kx, kp = jax.random.split(key)
    x = jax.random.normal(kx, (batch, state_dim), dtype=jnp.float32)
    raw_params = init_params(kp, state_dim, action_dim)
    kparams = prepare_params(raw_params, action_dim)

    fwd = jax.jit(functools.partial(dueling_dqn_forward, action_dim=action_dim))
    q = jax.block_until_ready(fwd(x, kparams))

    q_ref = reference_forward(x, raw_params)
    assert q.shape == (batch, action_dim)
    max_err = float(jnp.max(jnp.abs(q - q_ref)))
    # bf16 matmul operands with f32 accumulation -> small, bounded deviation
    assert jnp.allclose(q, q_ref, atol=5e-2, rtol=5e-2), \
        f"mismatch vs reference (max abs err {max_err})"

    print("KERNEL_OK")
</pallas_src>

<mosaic_0001>
module attributes {stable_mosaic.version = 11 : i64} {
  func.func @_dueling_dqn_kernel(%arg0: i32, %arg1: memref<256x16xbf16, #tpu.memory_space<vmem>>, %arg2: memref<16x128xbf16, #tpu.memory_space<vmem>>, %arg3: memref<1x128xf32, #tpu.memory_space<vmem>>, %arg4: memref<128x256xbf16, #tpu.memory_space<vmem>>, %arg5: memref<1x256xf32, #tpu.memory_space<vmem>>, %arg6: memref<256x8xbf16, #tpu.memory_space<vmem>>, %arg7: memref<1x8xf32, #tpu.memory_space<vmem>>, %arg8: memref<256x8xf32, #tpu.memory_space<vmem>>) attributes {dimension_semantics = [#tpu.dimension_semantics<parallel>], iteration_bounds = array<i64: 1>, scalar_prefetch = 0 : i64, scratch_operands = 0 : i64, tpu.core_type = #tpu.core_type<tc>, window_params = [{transform_indices = @transform_0, window_bounds = array<i64: 256, 16>}, {pipeline_mode = #tpu.pipeline_mode<synchronous>, transform_indices = @transform_1, window_bounds = array<i64: 16, 128>}, {pipeline_mode = #tpu.pipeline_mode<synchronous>, transform_indices = @transform_2, window_bounds = array<i64: 1, 128>}, {pipeline_mode = #tpu.pipeline_mode<synchronous>, transform_indices = @transform_3, window_bounds = array<i64: 128, 256>}, {pipeline_mode = #tpu.pipeline_mode<synchronous>, transform_indices = @transform_4, window_bounds = array<i64: 1, 256>}, {pipeline_mode = #tpu.pipeline_mode<synchronous>, transform_indices = @transform_5, window_bounds = array<i64: 256, 8>}, {pipeline_mode = #tpu.pipeline_mode<synchronous>, transform_indices = @transform_6, window_bounds = array<i64: 1, 8>}, {transform_indices = @transform_7, window_bounds = array<i64: 256, 8>}]} {
    %c0 = arith.constant 0 : index
    %c0_0 = arith.constant 0 : index
    %0 = vector.load %arg1[%c0, %c0_0] : memref<256x16xbf16, #tpu.memory_space<vmem>>, vector<256x16xbf16>
    %c0_1 = arith.constant 0 : index
    %c0_2 = arith.constant 0 : index
    %1 = vector.load %arg2[%c0_1, %c0_2] : memref<16x128xbf16, #tpu.memory_space<vmem>>, vector<16x128xbf16>
    %cst = arith.constant dense<0.000000e+00> : vector<256x128xf32>
    %2 = tpu.matmul %0, %1, %cst {dimension_numbers = #tpu.dot_dimension_numbers<[1], [0], [0], [1], [0, 0, 1, 1], [], []>} : vector<256x16xbf16>, vector<16x128xbf16>, vector<256x128xf32> -> vector<256x128xf32>
    %c0_3 = arith.constant 0 : index
    %c0_4 = arith.constant 0 : index
    %3 = vector.load %arg3[%c0_3, %c0_4] : memref<1x128xf32, #tpu.memory_space<vmem>>, vector<1x128xf32>
    %4 = vector.broadcast %3 : vector<1x128xf32> to vector<256x128xf32>
    %5 = arith.addf %2, %4 : vector<256x128xf32>
    %cst_5 = arith.constant 0.000000e+00 : f32
    %6 = vector.broadcast %cst_5 : f32 to vector<256x128xf32>
    %7 = arith.maximumf %5, %6 : vector<256x128xf32>
    %8 = arith.truncf %7 : vector<256x128xf32> to vector<256x128xbf16>
    %c0_6 = arith.constant 0 : index
    %c0_7 = arith.constant 0 : index
    %9 = vector.load %arg4[%c0_6, %c0_7] : memref<128x256xbf16, #tpu.memory_space<vmem>>, vector<128x256xbf16>
    %cst_8 = arith.constant dense<0.000000e+00> : vector<256x256xf32>
    %10 = tpu.matmul %8, %9, %cst_8 {dimension_numbers = #tpu.dot_dimension_numbers<[1], [0], [0], [1], [0, 0, 1, 1], [], []>} : vector<256x128xbf16>, vector<128x256xbf16>, vector<256x256xf32> -> vector<256x256xf32>
    %c0_9 = arith.constant 0 : index
    %c0_10 = arith.constant 0 : index
    %11 = vector.load %arg5[%c0_9, %c0_10] : memref<1x256xf32, #tpu.memory_space<vmem>>, vector<1x256xf32>
    %12 = vector.broadcast %11 : vector<1x256xf32> to vector<256x256xf32>
    %13 = arith.addf %10, %12 : vector<256x256xf32>
    %cst_11 = arith.constant 0.000000e+00 : f32
    %14 = vector.broadcast %cst_11 : f32 to vector<256x256xf32>
    %15 = arith.maximumf %13, %14 : vector<256x256xf32>
    %16 = arith.truncf %15 : vector<256x256xf32> to vector<256x256xbf16>
    %c0_12 = arith.constant 0 : index
    %c0_13 = arith.constant 0 : index
    %17 = vector.load %arg6[%c0_12, %c0_13] : memref<256x8xbf16, #tpu.memory_space<vmem>>, vector<256x8xbf16>
    %cst_14 = arith.constant dense<0.000000e+00> : vector<256x8xf32>
    %18 = tpu.matmul %16, %17, %cst_14 {dimension_numbers = #tpu.dot_dimension_numbers<[1], [0], [0], [1], [0, 0, 1, 1], [], []>} : vector<256x256xbf16>, vector<256x8xbf16>, vector<256x8xf32> -> vector<256x8xf32>
    %c0_15 = arith.constant 0 : index
    %c0_16 = arith.constant 0 : index
    %19 = vector.load %arg7[%c0_15, %c0_16] : memref<1x8xf32, #tpu.memory_space<vmem>>, vector<1x8xf32>
    %20 = vector.broadcast %19 : vector<1x8xf32> to vector<256x8xf32>
    %21 = arith.addf %18, %20 : vector<256x8xf32>
    %c0_17 = arith.constant 0 : index
    %c0_18 = arith.constant 0 : index
    %22 = vector.load %arg8[%c0_17, %c0_18] : memref<256x8xf32, #tpu.memory_space<vmem>>, vector<256x8xf32>
    tpu.vector_store %arg8[%c0_17, %c0_18], %21 {strides = array<i32>} : memref<256x8xf32, #tpu.memory_space<vmem>>, vector<256x8xf32>,
    return
  }
  func.func @transform_0(%arg0: i32) -> (i32, i32) {
    %c0_i32 = arith.constant 0 : i32
    %c0_i32_0 = arith.constant 0 : i32
    return %arg0, %c0_i32 : i32, i32
  }
  func.func @transform_1(%arg0: i32) -> (i32, i32) {
    %c0_i32 = arith.constant 0 : i32
    %c0_i32_0 = arith.constant 0 : i32
    %c0_i32_1 = arith.constant 0 : i32
    return %c0_i32, %c0_i32_0 : i32, i32
  }
  func.func @transform_2(%arg0: i32) -> (i32, i32) {
    %c0_i32 = arith.constant 0 : i32
    %c0_i32_0 = arith.constant 0 : i32
    %c0_i32_1 = arith.constant 0 : i32
    return %c0_i32, %c0_i32_0 : i32, i32
  }
  func.func @transform_3(%arg0: i32) -> (i32, i32) {
    %c0_i32 = arith.constant 0 : i32
    %c0_i32_0 = arith.constant 0 : i32
    %c0_i32_1 = arith.constant 0 : i32
    return %c0_i32, %c0_i32_0 : i32, i32
  }
  func.func @transform_4(%arg0: i32) -> (i32, i32) {
    %c0_i32 = arith.constant 0 : i32
    %c0_i32_0 = arith.constant 0 : i32
    %c0_i32_1 = arith.constant 0 : i32
    return %c0_i32, %c0_i32_0 : i32, i32
  }
  func.func @transform_5(%arg0: i32) -> (i32, i32) {
    %c0_i32 = arith.constant 0 : i32
    %c0_i32_0 = arith.constant 0 : i32
    %c0_i32_1 = arith.constant 0 : i32
    return %c0_i32, %c0_i32_0 : i32, i32
  }
  func.func @transform_6(%arg0: i32) -> (i32, i32) {
    %c0_i32 = arith.constant 0 : i32
    %c0_i32_0 = arith.constant 0 : i32
    %c0_i32_1 = arith.constant 0 : i32
    return %c0_i32, %c0_i32_0 : i32, i32
  }
  func.func @transform_7(%arg0: i32) -> (i32, i32) {
    %c0_i32 = arith.constant 0 : i32
    %c0_i32_0 = arith.constant 0 : i32
    return %arg0, %c0_i32 : i32, i32
  }
}

</mosaic_0001>

<bundles_post_ra>
// kernel: dueling_dqn_forward.1
= control target key start
LH: loop header
LB: loop body
LE: loop exit
PB: predicated region body
PF: predicated region fallthrough
CT: control target
= control target key end

     0   :  { %vm154_vm0 = vcmask 130048   ;;  %v1432_v33 = vmov 0   ;;  %vm1105_vm1 = vcmask 64512   ;;  %s1940_s1 = inlined_call_operand.vmem [shape: bf16[16,128], index: 1, kind: input, shape index: {}]   ;;  %s1941_s0 = inlined_call_operand.vmem [shape: bf16[256,16], index: 0, kind: input, shape index: {}]   ;;  %s1942_s3 = inlined_call_operand.vmem [shape: bf16[128,256], index: 3, kind: input, shape index: {}]   ;;  %s1943_s2 = inlined_call_operand.vmem [shape: f32[1,128], index: 2, kind: input, shape index: {}]   ;;  %s1944_s5 = inlined_call_operand.vmem [shape: bf16[256,8], index: 5, kind: input, shape index: {}]   ;;  %s1945_s4 = inlined_call_operand.vmem [shape: f32[1,256], index: 4, kind: input, shape index: {}]   ;;  %s1946_s6 = inlined_call_operand.vmem [shape: f32[1,8], index: 6, kind: input, shape index: {}]   ;;  %s1947_s7 = inlined_call_operand.vmem [shape: f32[256,8], index: 7, kind: output, shape index: {}]  }
   0x1   :  { %v1375_v0 = vld [vmem:[%s1940_s1] sm:$0xff]   ;;  %v1377_v2 = vld [vmem:[%s1941_s0 + $0x8] sm:$0xff]   ;;  %v1378_v3 = vld [vmem:[%s1941_s0 + $0x10] sm:$0xff]  }
   0x2   :  { %v1376_v1 = vld [vmem:[%s1941_s0] sm:$0xff]   ;;  %1338 = vmatprep.subr.bf16.mxu0 %v1375_v0  ;;  %1372 = vmatprep.subr.bf16.mxu1 %v1375_v0  ;;  %v1379_v4 = vld [vmem:[%s1941_s0 + $0x18] sm:$0xff]   ;;  %v1385_v7 = vld [vmem:[%s1941_s0 + $0x48] sm:$0xff]  }
   0x3   :  { %1339 = vmatpush3.bf16.msra.mxu0 %v1375_v0  ;;  %1340 = vmatprep.mubr.msk.bf16.mxu0 %vm154_vm0, %v1376_v1  ;;  %v1380_v5 = vld [vmem:[%s1941_s0 + $0x20] sm:$0xff]   ;;  %v1386_v8 = vld [vmem:[%s1941_s0 + $0x50] sm:$0xff]   ;;  %v1387_v9 = vld [vmem:[%s1941_s0 + $0x58] sm:$0xff]  }
   0x4   :  { %1373 = vmatpush3.bf16.msra.mxu1 %v1375_v0  ;;  %v1384_v6 = vld [vmem:[%s1941_s0 + $0x40] sm:$0xff]   ;;  %v1381_v10 = vld [vmem:[%s1941_s0 + $0x28] sm:$0xff]   ;;  %v1382_v14 = vld [vmem:[%s1941_s0 + $0x30] sm:$0xff]  }
   0x5   :  { %1356 = vmatprep.mubr.msk.bf16.mxu1 %vm154_vm0, %v1384_v6  ;;  %v1388_v11 = vld [vmem:[%s1941_s0 + $0x60] sm:$0xff]   ;;  %v1397_v15 = vld [vmem:[%s1942_s3 + $0x14] ss:$8 sps:$4 sm:$0xff]   ;;  %v1395_v16 = vld [vmem:[%s1942_s3 + $0x10] ss:$8 sps:$4 sm:$0xff]  }
   0x6   :  { %1341 = vmatmul.mubr.msk.bf16.vlgmr.msra.gmra.mrb[0].mxu0 %vm154_vm0, %v1377_v2  ;;  %v1392_v12 = vld [vmem:[%s1942_s3] ss:$8 sps:$4 sm:$0xff]   ;;  %v1394_v13 = vld [vmem:[%s1942_s3 + $0x4] ss:$8 sps:$4 sm:$0xff]   ;;  %v1390_v19 = vld [vmem:[%s1941_s0 + $0x70] sm:$0xff]  }
   0x7   :  { %1344 = vmatprep.mubr.msk.bf16.mxu0 %vm154_vm0, %v1378_v3  ;;  %1357 = vmatmul.mubr.msk.bf16.vlgmr.msra.gmra.mrb[0].mxu1 %vm154_vm0, %v1385_v7  ;;  %v1400_v17 = vld [vmem:[%s1942_s3 + $0x24] ss:$8 sps:$4 sm:$0xff]   ;;  %v1398_v20 = vld [vmem:[%s1942_s3 + $0x20] ss:$8 sps:$4 sm:$0xff]   ;;  %v1383_v21 = vld [vmem:[%s1941_s0 + $0x38] sm:$0xff]  }
   0x8   :  { %1360 = vmatprep.mubr.msk.bf16.mxu1 %vm154_vm0, %v1386_v8  ;;  %520 = vmatprep.subr.bf16.mxu1 %v1394_v13  ;;  %v1389_v18 = vld [vmem:[%s1941_s0 + $0x68] sm:$0xff]   ;;  %v1403_v22 = vld [vmem:[%s1942_s3 + $0x34] ss:$8 sps:$4 sm:$0xff]   ;;  %v1401_v23 = vld [vmem:[%s1942_s3 + $0x30] ss:$8 sps:$4 sm:$0xff]  }
   0x9   :  { %521 = vmatpush1.bf16.msra.mxu1 %v1392_v12  ;;  %v1406_v24 = vld [vmem:[%s1942_s3 + $0x44] ss:$8 sps:$4 sm:$0xff]   ;;  %v1391_v25 = vld [vmem:[%s1941_s0 + $0x78] sm:$0xff]   ;;  %v1404_v26 = vld [vmem:[%s1942_s3 + $0x40] ss:$8 sps:$4 sm:$0xff]  }
   0xa   :  { %522 = vmatprep.subr.bf16.mxu1 %v1397_v15  ;;  %v1409_v27 = vld [vmem:[%s1942_s3 + $0x54] ss:$8 sps:$4 sm:$0xff]   ;;  %v1407_v28 = vld [vmem:[%s1942_s3 + $0x50] ss:$8 sps:$4 sm:$0xff]   ;;  %v1412_v29 = vld [vmem:[%s1942_s3 + $0x64] ss:$8 sps:$4 sm:$0xff]  }
   0xb   :  { %v1410_v30 = vld [vmem:[%s1942_s3 + $0x60] ss:$8 sps:$4 sm:$0xff]   ;;  %v1415_v31 = vld [vmem:[%s1942_s3 + $0x74] ss:$8 sps:$4 sm:$0xff]   ;;  %v1413_v32 = vld [vmem:[%s1942_s3 + $0x70] ss:$8 sps:$4 sm:$0xff]  }
   0xc   :  { %v1592_v34 = vld [vmem:[%s1943_s2] ss:$0 sm:$0xff]  ;;  %v1418_v50 = vld [vmem:[%s1944_s5 + $0x48] sm:$0xff]   ;;  %v1420_v55 = vld [vmem:[%s1944_s5 + $0x50] sm:$0xff]  }
   0xd   :  { %523 = vmatpush1.bf16.msra.mxu1 %v1395_v16  ;;  %v1416_v45 = vld [vmem:[%s1944_s5 + $0x40] sm:$0xff]   ;;  %v1419_v51 = vld [vmem:[%s1944_s5 + $0x8] sm:$0xff]   ;;  %v1422_v13 = vld [vmem:[%s1944_s5 + $0x58] sm:$0xff]  }
   0xe   :  { %1345 = vmatmul.mubr.msk.bf16.gmra.mrb[4].mxu0 %vm154_vm0, %v1379_v4  ;;  %524 = vmatprep.subr.bf16.mxu1 %v1400_v17  ;;  %v1417_v47 = vld [vmem:[%s1944_s5] sm:$0xff]   ;;  %v1423_v16 = vld [vmem:[%s1944_s5 + $0x18] sm:$0xff]  }
   0xf   :  { %1348 = vmatprep.mubr.msk.bf16.mxu0 %vm154_vm0, %v1380_v5  ;;  %1361 = vmatmul.mubr.msk.bf16.gmra.mrb[4].mxu1 %vm154_vm0, %v1387_v9  ;;  %v1421_v9 = vld [vmem:[%s1944_s5 + $0x10] sm:$0xff]  }
  0x10   :  { %1364 = vmatprep.mubr.msk.bf16.mxu1 %vm154_vm0, %v1388_v11  ;;  %1226 = vmatprep.subr.bf16.mxu0 %v1416_v45 }
  0x11   :  { %525 = vmatpush1.bf16.msra.mxu1 %v1398_v20  ;;  %1227 = vmatpush3.bf16.msra.mxu0 %v1417_v47  ;;  %v1426_v47 = vld [vmem:[%s1944_s5 + $0x68] sm:$0xff]  }
  0x12   :  { %526 = vmatprep.subr.bf16.mxu1 %v1403_v22  ;;  %1228 = vmatprep.subr.bf16.mxu0 %v1418_v50 }
  0x15   :  { %527 = vmatpush1.bf16.msra.mxu1 %v1401_v23  ;;  %1229 = vmatpush3.bf16.msra.mxu0 %v1419_v51  ;;  %v1424_v23 = vld [vmem:[%s1944_s5 + $0x60] sm:$0xff]  }
  0x16   :  { %1349 = vmatmul.mubr.msk.bf16.gmra.mrb[8].mxu0 %vm154_vm0, %v1381_v10  ;;  %528 = vmatprep.subr.bf16.mxu1 %v1406_v24 }
  0x17   :  { %1352 = vmatprep.mubr.msk.bf16.mxu0 %vm154_vm0, %v1382_v14  ;;  %1365 = vmatmul.mubr.msk.bf16.gmra.mrb[8].mxu1 %vm154_vm0, %v1389_v18 }
  0x18   :  { %1368 = vmatprep.mubr.msk.bf16.mxu1 %vm154_vm0, %v1390_v19  ;;  %1230 = vmatprep.subr.bf16.mxu0 %v1420_v55 }
  0x19   :  { %529 = vmatpush1.bf16.msra.mxu1 %v1404_v26  ;;  %1231 = vmatpush3.bf16.msra.mxu0 %v1421_v9 }
  0x1a   :  { %530 = vmatprep.subr.bf16.mxu1 %v1409_v27  ;;  %1232 = vmatprep.subr.bf16.mxu0 %v1422_v13 }
  0x1d   :  { %531 = vmatpush1.bf16.msra.mxu1 %v1407_v28  ;;  %1233 = vmatpush3.bf16.msra.mxu0 %v1423_v16 }
  0x1e   :  { %1353 = vmatmul.mubr.msk.bf16.gmra.mrb[12].mxu0 %vm154_vm0, %v1383_v21  ;;  %532 = vmatprep.subr.bf16.mxu1 %v1412_v29 }
  0x1f   :  { %1369 = vmatmul.mubr.msk.bf16.gmra.mrb[12].mxu1 %vm154_vm0, %v1391_v25  ;;  %1234 = vmatprep.subr.bf16.mxu0 %v1424_v23 }
  0x20   :  { %552 = vmatprep.mubr.bf16.mxu1 %v1432_v33 }
  0x21   :  { %533 = vmatpush1.bf16.msra.mxu1 %v1410_v30 }
  0x22   :  { %534 = vmatprep.subr.bf16.mxu1 %v1415_v31 }
  0x25   :  { %535 = vmatpush1.bf16.msra.mxu1 %v1413_v32 }
  0xd9   :  { %v1342_v35 = vpop.f32.mrb[0].mxu0 }
  0xda   :  { %v246_v36 = vadd.f32 %v1342_v35, %v1592_v34  ;;  %v237_v37 = vpop.f32.mrb[1].mxu0  ;;  %v1358_v49 = vpop.f32.mrb[0].mxu1 }
  0xdb   :  { %v238_v38 = vadd.f32 %v1592_v34, %v237_v37  ;;  %v1343_v39 = vpop.f32.mrb[2].mxu0  ;;  %v310_v53 = vadd.f32 %v1358_v49, %v1592_v34  ;;  %v301_v54 = vpop.f32.mrb[1].mxu1 }
  0xdc   :  { %v366_v40 = vmax.f32 %v246_v36, 0.0  ;;  %v249_v41 = vadd.f32 %v1343_v39, %v1592_v34  ;;  %v240_v42 = vpop.f32.mrb[3].mxu0  ;;  %v302_v58 = vadd.f32 %v1592_v34, %v301_v54  ;;  %v1359_v59 = vpop.f32.mrb[2].mxu1 }
  0xdd   :  { %v364_v43 = vmax.f32 %v238_v38, 0.0  ;;  %v241_v44 = vadd.f32 %v1592_v34, %v240_v42  ;;  %v382_v62 = vmax.f32 %v310_v53, 0.0  ;;  %v313_v63 = vadd.f32 %v1359_v59, %v1592_v34  ;;  %v304_v0 = vpop.f32.mrb[3].mxu1 }
  0xde   :  { %v367_v46 = vmax.f32 %v249_v41, 0.0  ;;  %v380_v3 = vmax.f32 %v302_v58, 0.0  ;;  %v305_v4 = vadd.f32 %v1592_v34, %v304_v0 }
  0xdf   :  { %v365_v48 = vmax.f32 %v241_v44, 0.0  ;;  %v383_v8 = vmax.f32 %v313_v63, 0.0 }
  0xe0   :  { %v397_v52 = vpack.c.bf16 %v367_v46, %v366_v40  ;;  %v381_v12 = vmax.f32 %v305_v4, 0.0 }
  0xe1   :  { %v396_v56 = vpack.c.bf16 %v365_v48, %v364_v43  ;;  %v1346_v57 = vpop.f32.mrb[4].mxu0  ;;  %v1628_v15 = vpack.c.bf16 %v383_v8, %v382_v62  ;;  %v1425_v43 = vld [vmem:[%s1944_s5 + $0x20] sm:$0xff]  }
  0xe2   :  { %v262_v60 = vadd.f32 %v1346_v57, %v1592_v34  ;;  %v253_v61 = vpop.f32.mrb[5].mxu0  ;;  %v1633_v18 = vpack.c.bf16 %v381_v12, %v380_v3  ;;  %v1362_v19 = vpop.f32.mrb[4].mxu1  ;;  %1235 = vmatpush3.bf16.msra.mxu0 %v1425_v43 }
  0xe3   :  { %553 = vmatmul.mubr.bf16.vlgmr.msra.gmra.mrb[16].mxu1 %v396_v56  ;;  %v254_v1 = vadd.f32 %v1592_v34, %v253_v61  ;;  %v1347_v2 = vpop.f32.mrb[6].mxu0  ;;  %v326_v21 = vadd.f32 %v1362_v19, %v1592_v34  ;;  %v317_v22 = vpop.f32.mrb[5].mxu1  ;;  %v1427_v56 = vld [vmem:[%s1944_s5 + $0x28] sm:$0xff]   ;;  %1236 = vmatprep.subr.bf16.mxu0 %v1426_v47 }
  0xe4   :  { %v370_v5 = vmax.f32 %v262_v60, 0.0  ;;  %v265_v6 = vadd.f32 %v1347_v2, %v1592_v34  ;;  %v256_v7 = vpop.f32.mrb[7].mxu0  ;;  %562 = vmatprep.mubr.bf16.mxu1 %v1432_v33  ;;  %v318_v26 = vadd.f32 %v1592_v34, %v317_v22  ;;  %v1363_v27 = vpop.f32.mrb[6].mxu1 }
  0xe5   :  { %v368_v10 = vmax.f32 %v254_v1, 0.0  ;;  %v257_v11 = vadd.f32 %v1592_v34, %v256_v7  ;;  %v386_v30 = vmax.f32 %v326_v21, 0.0  ;;  %v329_v31 = vadd.f32 %v1363_v27, %v1592_v34  ;;  %v320_v32 = vpop.f32.mrb[7].mxu1 }
  0xe6   :  { %v371_v14 = vmax.f32 %v265_v6, 0.0  ;;  %v384_v37 = vmax.f32 %v318_v26, 0.0  ;;  %v321_v38 = vadd.f32 %v1592_v34, %v320_v32  ;;  %1237 = vmatpush3.bf16.msra.mxu0 %v1427_v56 }
  0xe7   :  { %v369_v17 = vmax.f32 %v257_v11, 0.0  ;;  %v387_v42 = vmax.f32 %v329_v31, 0.0 }
  0xe8   :  { %v1635_v20 = vpack.c.bf16 %v371_v14, %v370_v5  ;;  %v385_v46 = vmax.f32 %v321_v38, 0.0  ;;  %v430_v38 = vlaneseq }
  0xe9   :  { %v398_v24 = vpack.c.bf16 %v369_v17, %v368_v10  ;;  %v1350_v25 = vpop.f32.mrb[8].mxu0  ;;  %v1655_v49 = vpack.c.bf16 %v387_v42, %v386_v30 }
  0xea   :  { %v278_v28 = vadd.f32 %v1350_v25, %v1592_v34  ;;  %v269_v29 = vpop.f32.mrb[9].mxu0  ;;  %v1657_v51 = vpack.c.bf16 %v385_v46, %v384_v37 }
  0xeb   :  { %563 = vmatmul.mubr.bf16.gmra.mrb[20].mxu1 %v397_v52  ;;  %v270_v35 = vadd.f32 %v1592_v34, %v269_v29  ;;  %v1351_v36 = vpop.f32.mrb[10].mxu0  ;;  %v1366_v52 = vpop.f32.mrb[8].mxu1 }
  0xec   :  { %572 = vmatprep.mubr.bf16.mxu1 %v1432_v33  ;;  %v374_v39 = vmax.f32 %v278_v28, 0.0  ;;  %v281_v40 = vadd.f32 %v1351_v36, %v1592_v34  ;;  %v272_v41 = vpop.f32.mrb[11].mxu0  ;;  %v342_v54 = vadd.f32 %v1366_v52, %v1592_v34  ;;  %v333_v55 = vpop.f32.mrb[9].mxu1 }
  0xed   :  { %v372_v44 = vmax.f32 %v270_v35, 0.0  ;;  %v273_v45 = vadd.f32 %v1592_v34, %v272_v41  ;;  %v334_v59 = vadd.f32 %v1592_v34, %v333_v55  ;;  %v1367_v60 = vpop.f32.mrb[10].mxu1  ;;  %v428_v41 = vld [vmem:[%s1945_s4] sm:$0x3] }
  0xee   :  { %v375_v48 = vmax.f32 %v281_v40, 0.0  ;;  %v390_v63 = vmax.f32 %v342_v54, 0.0  ;;  %v345_v0 = vadd.f32 %v1367_v60, %v1592_v34  ;;  %v336_v1 = vpop.f32.mrb[11].mxu1 }
  0xef   :  { %v373_v50 = vmax.f32 %v273_v45, 0.0  ;;  %v388_v4 = vmax.f32 %v334_v59, 0.0  ;;  %v337_v5 = vadd.f32 %v1592_v34, %v336_v1 }
  0xf0   :  { %v401_v53 = vpack.c.bf16 %v375_v48, %v374_v39  ;;  %v391_v9 = vmax.f32 %v345_v0, 0.0  ;;  %v431_v39 = vshrl.u32 %v430_v38, 7 }
  0xf1   :  { %v400_v57 = vpack.c.bf16 %v373_v50, %v372_v44  ;;  %v1354_v58 = vpop.f32.mrb[12].mxu0  ;;  %v389_v12 = vmax.f32 %v337_v5, 0.0 }
  0xf2   :  { %v294_v61 = vadd.f32 %v1354_v58, %v1592_v34  ;;  %v285_v62 = vpop.f32.mrb[13].mxu0  ;;  %v409_v14 = vpack.c.bf16 %v391_v9, %v390_v63  ;;  %v1370_v19 = vpop.f32.mrb[12].mxu1  ;;  %v432_v40 = vsub.s32 0, %v431_v39  ;;  %v436_v42 = vsub.s32 1, %v431_v39 }
  0xf3   :  { %573 = vmatmul.mubr.bf16.gmra.mrb[24].mxu1 %v398_v24  ;;  %v286_v2 = vadd.f32 %v1592_v34, %v285_v62  ;;  %v1355_v3 = vpop.f32.mrb[14].mxu0  ;;  %v408_v17 = vpack.c.bf16 %v389_v12, %v388_v4  ;;  %v358_v22 = vadd.f32 %v1370_v19, %v1592_v34  ;;  %v349_v23 = vpop.f32.mrb[13].mxu1 }
  0xf4   :  { %582 = vmatprep.mubr.bf16.mxu1 %v1432_v33  ;;  %v378_v6 = vmax.f32 %v294_v61, 0.0  ;;  %v297_v7 = vadd.f32 %v1355_v3, %v1592_v34  ;;  %v288_v8 = vpop.f32.mrb[15].mxu0  ;;  %v350_v25 = vadd.f32 %v1592_v34, %v349_v23  ;;  %v1371_v26 = vpop.f32.mrb[14].mxu1  ;;  %v1707_v43 = vrot.slane %v428_v41, %v432_v40 }
  0xf5   :  { %v376_v10 = vmax.f32 %v286_v2, 0.0  ;;  %v289_v11 = vadd.f32 %v1592_v34, %v288_v8  ;;  %v394_v27 = vmax.f32 %v358_v22, 0.0  ;;  %v361_v28 = vadd.f32 %v1371_v26, %v1592_v34  ;;  %v352_v29 = vpop.f32.mrb[15].mxu1 }
  0xf6   :  { %v379_v13 = vmax.f32 %v297_v7, 0.0  ;;  %v392_v30 = vmax.f32 %v350_v25, 0.0  ;;  %v353_v31 = vadd.f32 %v1592_v34, %v352_v29  ;;  %v1428_v34 = vld [vmem:[%s1944_s5 + $0x70] sm:$0xff]   ;;  %v1709_v44 = vrot.slane %v428_v41, %v436_v42 }
  0xf7   :  { %v377_v16 = vmax.f32 %v289_v11, 0.0  ;;  %v395_v32 = vmax.f32 %v361_v28, 0.0  ;;  %1238 = vmatprep.subr.bf16.mxu0 %v1428_v34 }
  0xf8   :  { %v403_v21 = vpack.c.bf16 %v379_v13, %v378_v6  ;;  %v393_v35 = vmax.f32 %v353_v31, 0.0 }
  0xf9   :  { %v402_v24 = vpack.c.bf16 %v377_v16, %v376_v10  ;;  %v411_v36 = vpack.c.bf16 %v395_v32, %v394_v27 }
  0xfa   :  { %v410_v37 = vpack.c.bf16 %v393_v35, %v392_v30 }
  0xfb   :  { %583 = vmatmul.mubr.bf16.gmra.mrb[28].mxu1 %v1635_v20  ;;  %v1429_v20 = vld [vmem:[%s1944_s5 + $0x30] sm:$0xff]  }
  0xfc   :  { %592 = vmatprep.mubr.bf16.mxu1 %v1432_v33  ;;  %1239 = vmatpush3.bf16.msra.mxu0 %v1429_v20 }
 0x103   :  { %593 = vmatmul.mubr.bf16.gmra.mrb[32].mxu1 %v400_v57 }
 0x104   :  { %602 = vmatprep.mubr.bf16.mxu1 %v1432_v33 }
 0x10b   :  { %603 = vmatmul.mubr.bf16.gmra.mrb[36].mxu1 %v401_v53 }
 0x10c   :  { %612 = vmatprep.mubr.bf16.mxu1 %v1432_v33 }
 0x113   :  { %613 = vmatmul.mubr.bf16.gmra.mrb[40].mxu1 %v402_v24 }
 0x114   :  { %622 = vmatprep.mubr.bf16.mxu1 %v1432_v33 }
 0x11b   :  { %623 = vmatmul.mubr.bf16.gmra.mrb[44].mxu1 %v403_v21 }
 0x11c   :  { %632 = vmatprep.mubr.bf16.mxu1 %v1432_v33 }
 0x123   :  { %633 = vmatmul.mubr.bf16.gmra.mrb[48].mxu1 %v1633_v18  ;;  %v1431_v18 = vld [vmem:[%s1944_s5 + $0x38] sm:$0xff]  }
 0x124   :  { %642 = vmatprep.mubr.bf16.mxu1 %v1432_v33 }
 0x12b   :  { %643 = vmatmul.mubr.bf16.gmra.mrb[52].mxu1 %v1628_v15  ;;  %v1430_v15 = vld [vmem:[%s1944_s5 + $0x78] sm:$0xff]  }
 0x12c   :  { %652 = vmatprep.mubr.bf16.mxu1 %v1432_v33  ;;  %1240 = vmatprep.subr.bf16.mxu0 %v1430_v15 }
 0x12d   :  { %1241 = vmatpush3.bf16.msra.mxu0 %v1431_v18 }
 0x133   :  { %653 = vmatmul.mubr.bf16.gmra.mrb[56].mxu1 %v1657_v51 }
 0x134   :  { %662 = vmatprep.mubr.bf16.mxu1 %v1432_v33 }
 0x13b   :  { %663 = vmatmul.mubr.bf16.gmra.mrb[60].mxu1 %v1655_v49 }
 0x13c   :  { %672 = vmatprep.mubr.bf16.mxu1 %v1432_v33 }
 0x143   :  { %673 = vmatmul.mubr.bf16.gmra.mrb[64].mxu1 %v408_v17 }
 0x144   :  { %682 = vmatprep.mubr.bf16.mxu1 %v1432_v33 }
 0x14b   :  { %683 = vmatmul.mubr.bf16.gmra.mrb[68].mxu1 %v409_v14 }
 0x14c   :  { %692 = vmatprep.mubr.bf16.mxu1 %v1432_v33 }
 0x153   :  { %693 = vmatmul.mubr.bf16.gmra.mrb[72].mxu1 %v410_v37 }
 0x154   :  { %702 = vmatprep.mubr.bf16.mxu1 %v1432_v33 }
 0x15b   :  { %703 = vmatmul.mubr.bf16.gmra.mrb[76].mxu1 %v411_v36 }
 0x1b6   :  { %v554_v45 = vpop.f32.mrb[16].mxu1 }
 0x1b7   :  { %v555_v46 = vadd.f32 %v554_v45, %v1707_v43  ;;  %v556_v47 = vpop.f32.mrb[17].mxu1 }
 0x1b8   :  { %v557_v48 = vadd.f32 %v556_v47, %v1709_v44  ;;  %v558_v33 = vpop.f32.mrb[18].mxu1 }
 0x1b9   :  { %v559_v49 = vadd.f32 %v558_v33, %v1707_v43  ;;  %v560_v50 = vpop.f32.mrb[19].mxu1  ;;  %v713_v52 = vmax.f32 %v555_v46, 0.0 }
 0x1ba   :  { %v561_v51 = vadd.f32 %v560_v50, %v1709_v44  ;;  %v714_v54 = vmax.f32 %v557_v48, 0.0 }
 0x1bb   :  { %v715_v53 = vmax.f32 %v559_v49, 0.0 }
 0x1bc   :  { %v716_v55 = vmax.f32 %v561_v51, 0.0 }
 0x1bd   :  { %v777_v56 = vpack.c.bf16 %v715_v53, %v713_v52 }
 0x1be   :  { %v778_v57 = vpack.c.bf16 %v716_v55, %v714_v54  ;;  %v564_v58 = vpop.f32.mrb[20].mxu1 }
 0x1bf   :  { %v565_v59 = vadd.f32 %v564_v58, %v1707_v43  ;;  %v566_v60 = vpop.f32.mrb[21].mxu1 }
 0x1c0   :  { %v567_v61 = vadd.f32 %v566_v60, %v1709_v44  ;;  %v568_v62 = vpop.f32.mrb[22].mxu1  ;;  %976 = vmatprep.mubr.bf16.mxu0 %v778_v57 }
 0x1c1   :  { %v569_v63 = vadd.f32 %v568_v62, %v1707_v43  ;;  %v570_v0 = vpop.f32.mrb[23].mxu1  ;;  %977 = vmatmul.mubr.bf16.vlgmr.msra.gmra.mrb[16].mxu0 %v777_v56  ;;  %v717_v2 = vmax.f32 %v565_v59, 0.0 }
 0x1c2   :  { %v571_v1 = vadd.f32 %v570_v0, %v1709_v44  ;;  %v718_v4 = vmax.f32 %v567_v61, 0.0 }
 0x1c3   :  { %v719_v3 = vmax.f32 %v569_v63, 0.0 }
 0x1c4   :  { %v720_v5 = vmax.f32 %v571_v1, 0.0 }
 0x1c5   :  { %v779_v6 = vpack.c.bf16 %v719_v3, %v717_v2 }
 0x1c6   :  { %v780_v7 = vpack.c.bf16 %v720_v5, %v718_v4  ;;  %v574_v8 = vpop.f32.mrb[24].mxu1 }
 0x1c7   :  { %v575_v9 = vadd.f32 %v574_v8, %v1707_v43  ;;  %v576_v10 = vpop.f32.mrb[25].mxu1 }
 0x1c8   :  { %v577_v11 = vadd.f32 %v576_v10, %v1709_v44  ;;  %v578_v12 = vpop.f32.mrb[26].mxu1  ;;  %984 = vmatprep.mubr.bf16.mxu0 %v780_v7 }
 0x1c9   :  { %v579_v13 = vadd.f32 %v578_v12, %v1707_v43  ;;  %v580_v14 = vpop.f32.mrb[27].mxu1  ;;  %985 = vmatmul.mubr.bf16.gmra.mrb[20].mxu0 %v779_v6  ;;  %v721_v17 = vmax.f32 %v575_v9, 0.0 }
 0x1ca   :  { %v581_v16 = vadd.f32 %v580_v14, %v1709_v44  ;;  %v722_v21 = vmax.f32 %v577_v11, 0.0 }
 0x1cb   :  { %v723_v19 = vmax.f32 %v579_v13, 0.0 }
 0x1cc   :  { %v724_v22 = vmax.f32 %v581_v16, 0.0 }
 0x1cd   :  { %v781_v23 = vpack.c.bf16 %v723_v19, %v721_v17 }
 0x1ce   :  { %v782_v24 = vpack.c.bf16 %v724_v22, %v722_v21  ;;  %v584_v25 = vpop.f32.mrb[28].mxu1 }
 0x1cf   :  { %v585_v26 = vadd.f32 %v584_v25, %v1707_v43  ;;  %v586_v27 = vpop.f32.mrb[29].mxu1 }
 0x1d0   :  { %v587_v28 = vadd.f32 %v586_v27, %v1709_v44  ;;  %v588_v29 = vpop.f32.mrb[30].mxu1  ;;  %992 = vmatprep.mubr.bf16.mxu0 %v782_v24 }
 0x1d1   :  { %v589_v30 = vadd.f32 %v588_v29, %v1707_v43  ;;  %v590_v31 = vpop.f32.mrb[31].mxu1  ;;  %993 = vmatmul.mubr.bf16.gmra.mrb[24].mxu0 %v781_v23  ;;  %v725_v35 = vmax.f32 %v585_v26, 0.0 }
 0x1d2   :  { %v591_v32 = vadd.f32 %v590_v31, %v1709_v44  ;;  %v726_v37 = vmax.f32 %v587_v28, 0.0 }
 0x1d3   :  { %v727_v36 = vmax.f32 %v589_v30, 0.0 }
 0x1d4   :  { %v728_v34 = vmax.f32 %v591_v32, 0.0 }
 0x1d5   :  { %v783_v20 = vpack.c.bf16 %v727_v36, %v725_v35 }
 0x1d6   :  { %v784_v15 = vpack.c.bf16 %v728_v34, %v726_v37  ;;  %v594_v18 = vpop.f32.mrb[32].mxu1 }
 0x1d7   :  { %v595_v38 = vadd.f32 %v594_v18, %v1707_v43  ;;  %v596_v39 = vpop.f32.mrb[33].mxu1 }
 0x1d8   :  { %v597_v40 = vadd.f32 %v596_v39, %v1709_v44  ;;  %v598_v41 = vpop.f32.mrb[34].mxu1  ;;  %1000 = vmatprep.mubr.bf16.mxu0 %v784_v15 }
 0x1d9   :  { %v599_v42 = vadd.f32 %v598_v41, %v1707_v43  ;;  %v600_v45 = vpop.f32.mrb[35].mxu1  ;;  %1001 = vmatmul.mubr.bf16.gmra.mrb[28].mxu0 %v783_v20  ;;  %v729_v47 = vmax.f32 %v595_v38, 0.0 }
 0x1da   :  { %v601_v46 = vadd.f32 %v600_v45, %v1709_v44  ;;  %v730_v33 = vmax.f32 %v597_v40, 0.0 }
 0x1db   :  { %v731_v48 = vmax.f32 %v599_v42, 0.0 }
 0x1dc   :  { %v732_v49 = vmax.f32 %v601_v46, 0.0 }
 0x1dd   :  { %v785_v50 = vpack.c.bf16 %v731_v48, %v729_v47 }
 0x1de   :  { %v786_v51 = vpack.c.bf16 %v732_v49, %v730_v33  ;;  %v604_v52 = vpop.f32.mrb[36].mxu1 }
 0x1df   :  { %v605_v53 = vadd.f32 %v604_v52, %v1707_v43  ;;  %v606_v54 = vpop.f32.mrb[37].mxu1 }
 0x1e0   :  { %v607_v55 = vadd.f32 %v606_v54, %v1709_v44  ;;  %v608_v56 = vpop.f32.mrb[38].mxu1  ;;  %1008 = vmatprep.mubr.bf16.mxu0 %v786_v51 }
 0x1e1   :  { %v609_v57 = vadd.f32 %v608_v56, %v1707_v43  ;;  %v610_v58 = vpop.f32.mrb[39].mxu1  ;;  %1009 = vmatmul.mubr.bf16.gmra.mrb[32].mxu0 %v785_v50  ;;  %v733_v60 = vmax.f32 %v605_v53, 0.0 }
 0x1e2   :  { %v611_v59 = vadd.f32 %v610_v58, %v1709_v44  ;;  %v734_v62 = vmax.f32 %v607_v55, 0.0 }
 0x1e3   :  { %v735_v61 = vmax.f32 %v609_v57, 0.0 }
 0x1e4   :  { %v736_v63 = vmax.f32 %v611_v59, 0.0 }
 0x1e5   :  { %v787_v0 = vpack.c.bf16 %v735_v61, %v733_v60 }
 0x1e6   :  { %v788_v1 = vpack.c.bf16 %v736_v63, %v734_v62  ;;  %v614_v2 = vpop.f32.mrb[40].mxu1 }
 0x1e7   :  { %v615_v3 = vadd.f32 %v614_v2, %v1707_v43  ;;  %v616_v4 = vpop.f32.mrb[41].mxu1 }
 0x1e8   :  { %v617_v5 = vadd.f32 %v616_v4, %v1709_v44  ;;  %v618_v6 = vpop.f32.mrb[42].mxu1  ;;  %1016 = vmatprep.mubr.bf16.mxu0 %v788_v1 }
 0x1e9   :  { %v619_v7 = vadd.f32 %v618_v6, %v1707_v43  ;;  %v620_v8 = vpop.f32.mrb[43].mxu1  ;;  %1017 = vmatmul.mubr.bf16.gmra.mrb[36].mxu0 %v787_v0  ;;  %v737_v10 = vmax.f32 %v615_v3, 0.0 }
 0x1ea   :  { %v621_v9 = vadd.f32 %v620_v8, %v1709_v44  ;;  %v738_v12 = vmax.f32 %v617_v5, 0.0 }
 0x1eb   :  { %v739_v11 = vmax.f32 %v619_v7, 0.0 }
 0x1ec   :  { %v740_v13 = vmax.f32 %v621_v9, 0.0 }
 0x1ed   :  { %v789_v14 = vpack.c.bf16 %v739_v11, %v737_v10 }
 0x1ee   :  { %v790_v16 = vpack.c.bf16 %v740_v13, %v738_v12  ;;  %v624_v17 = vpop.f32.mrb[44].mxu1 }
 0x1ef   :  { %v625_v19 = vadd.f32 %v624_v17, %v1707_v43  ;;  %v626_v21 = vpop.f32.mrb[45].mxu1 }
 0x1f0   :  { %v627_v22 = vadd.f32 %v626_v21, %v1709_v44  ;;  %v628_v23 = vpop.f32.mrb[46].mxu1  ;;  %1024 = vmatprep.mubr.bf16.mxu0 %v790_v16 }
 0x1f1   :  { %v629_v24 = vadd.f32 %v628_v23, %v1707_v43  ;;  %v630_v25 = vpop.f32.mrb[47].mxu1  ;;  %1025 = vmatmul.mubr.bf16.gmra.mrb[40].mxu0 %v789_v14  ;;  %v741_v27 = vmax.f32 %v625_v19, 0.0 }
 0x1f2   :  { %v631_v26 = vadd.f32 %v630_v25, %v1709_v44  ;;  %v742_v29 = vmax.f32 %v627_v22, 0.0 }
 0x1f3   :  { %v743_v28 = vmax.f32 %v629_v24, 0.0 }
 0x1f4   :  { %v744_v30 = vmax.f32 %v631_v26, 0.0 }
 0x1f5   :  { %v791_v31 = vpack.c.bf16 %v743_v28, %v741_v27 }
 0x1f6   :  { %v792_v32 = vpack.c.bf16 %v744_v30, %v742_v29  ;;  %v634_v35 = vpop.f32.mrb[48].mxu1 }
 0x1f7   :  { %v635_v36 = vadd.f32 %v634_v35, %v1707_v43  ;;  %v636_v37 = vpop.f32.mrb[49].mxu1 }
 0x1f8   :  { %v637_v34 = vadd.f32 %v636_v37, %v1709_v44  ;;  %v638_v20 = vpop.f32.mrb[50].mxu1  ;;  %1032 = vmatprep.mubr.bf16.mxu0 %v792_v32 }
 0x1f9   :  { %v639_v15 = vadd.f32 %v638_v20, %v1707_v43  ;;  %v640_v18 = vpop.f32.mrb[51].mxu1  ;;  %1033 = vmatmul.mubr.bf16.gmra.mrb[44].mxu0 %v791_v31  ;;  %v745_v39 = vmax.f32 %v635_v36, 0.0 }
 0x1fa   :  { %v641_v38 = vadd.f32 %v640_v18, %v1709_v44  ;;  %v746_v41 = vmax.f32 %v637_v34, 0.0 }
 0x1fb   :  { %v747_v40 = vmax.f32 %v639_v15, 0.0 }
 0x1fc   :  { %v748_v42 = vmax.f32 %v641_v38, 0.0 }
 0x1fd   :  { %v793_v45 = vpack.c.bf16 %v747_v40, %v745_v39 }
 0x1fe   :  { %v794_v46 = vpack.c.bf16 %v748_v42, %v746_v41  ;;  %v644_v47 = vpop.f32.mrb[52].mxu1 }
 0x1ff   :  { %v645_v48 = vadd.f32 %v644_v47, %v1707_v43  ;;  %v646_v33 = vpop.f32.mrb[53].mxu1 }
 0x200   :  { %v647_v49 = vadd.f32 %v646_v33, %v1709_v44  ;;  %v648_v50 = vpop.f32.mrb[54].mxu1  ;;  %1040 = vmatprep.mubr.bf16.mxu0 %v794_v46 }
 0x201   :  { %v649_v51 = vadd.f32 %v648_v50, %v1707_v43  ;;  %v650_v52 = vpop.f32.mrb[55].mxu1  ;;  %1041 = vmatmul.mubr.bf16.gmra.mrb[48].mxu0 %v793_v45  ;;  %v749_v54 = vmax.f32 %v645_v48, 0.0 }
 0x202   :  { %v651_v53 = vadd.f32 %v650_v52, %v1709_v44  ;;  %v750_v56 = vmax.f32 %v647_v49, 0.0 }
 0x203   :  { %v751_v55 = vmax.f32 %v649_v51, 0.0 }
 0x204   :  { %v752_v57 = vmax.f32 %v651_v53, 0.0 }
 0x205   :  { %v795_v58 = vpack.c.bf16 %v751_v55, %v749_v54 }
 0x206   :  { %v796_v59 = vpack.c.bf16 %v752_v57, %v750_v56  ;;  %v654_v60 = vpop.f32.mrb[56].mxu1 }
 0x207   :  { %v655_v61 = vadd.f32 %v654_v60, %v1707_v43  ;;  %v656_v62 = vpop.f32.mrb[57].mxu1 }
 0x208   :  { %v657_v63 = vadd.f32 %v656_v62, %v1709_v44  ;;  %v658_v0 = vpop.f32.mrb[58].mxu1  ;;  %1048 = vmatprep.mubr.bf16.mxu0 %v796_v59 }
 0x209   :  { %v659_v1 = vadd.f32 %v658_v0, %v1707_v43  ;;  %v660_v2 = vpop.f32.mrb[59].mxu1  ;;  %1049 = vmatmul.mubr.bf16.gmra.mrb[52].mxu0 %v795_v58  ;;  %v753_v4 = vmax.f32 %v655_v61, 0.0 }
 0x20a   :  { %v661_v3 = vadd.f32 %v660_v2, %v1709_v44  ;;  %v754_v6 = vmax.f32 %v657_v63, 0.0 }
 0x20b   :  { %v755_v5 = vmax.f32 %v659_v1, 0.0 }
 0x20c   :  { %v756_v7 = vmax.f32 %v661_v3, 0.0 }
 0x20d   :  { %v797_v8 = vpack.c.bf16 %v755_v5, %v753_v4 }
 0x20e   :  { %v798_v9 = vpack.c.bf16 %v756_v7, %v754_v6  ;;  %v664_v10 = vpop.f32.mrb[60].mxu1 }
 0x20f   :  { %v665_v11 = vadd.f32 %v664_v10, %v1707_v43  ;;  %v666_v12 = vpop.f32.mrb[61].mxu1 }
 0x210   :  { %v667_v13 = vadd.f32 %v666_v12, %v1709_v44  ;;  %v668_v14 = vpop.f32.mrb[62].mxu1  ;;  %1056 = vmatprep.mubr.bf16.mxu0 %v798_v9 }
 0x211   :  { %v669_v16 = vadd.f32 %v668_v14, %v1707_v43  ;;  %v670_v17 = vpop.f32.mrb[63].mxu1  ;;  %1057 = vmatmul.mubr.bf16.gmra.mrb[56].mxu0 %v797_v8  ;;  %v757_v21 = vmax.f32 %v665_v11, 0.0 }
 0x212   :  { %v671_v19 = vadd.f32 %v670_v17, %v1709_v44  ;;  %v758_v23 = vmax.f32 %v667_v13, 0.0 }
 0x213   :  { %v759_v22 = vmax.f32 %v669_v16, 0.0 }
 0x214   :  { %v760_v24 = vmax.f32 %v671_v19, 0.0 }
 0x215   :  { %v799_v25 = vpack.c.bf16 %v759_v22, %v757_v21  ;;  %v1778_v22 = vld [vmem:[%s1946_s6] ss:$0 sm:$0xff] }
 0x216   :  { %v800_v26 = vpack.c.bf16 %v760_v24, %v758_v23  ;;  %v674_v27 = vpop.f32.mrb[64].mxu1 }
 0x217   :  { %v675_v28 = vadd.f32 %v674_v27, %v1707_v43  ;;  %v676_v29 = vpop.f32.mrb[65].mxu1 }
 0x218   :  { %v677_v30 = vadd.f32 %v676_v29, %v1709_v44  ;;  %v678_v31 = vpop.f32.mrb[66].mxu1  ;;  %1064 = vmatprep.mubr.bf16.mxu0 %v800_v26 }
 0x219   :  { %v679_v32 = vadd.f32 %v678_v31, %v1707_v43  ;;  %v680_v35 = vpop.f32.mrb[67].mxu1  ;;  %1065 = vmatmul.mubr.bf16.gmra.mrb[60].mxu0 %v799_v25  ;;  %v761_v37 = vmax.f32 %v675_v28, 0.0 }
 0x21a   :  { %v681_v36 = vadd.f32 %v680_v35, %v1709_v44  ;;  %v762_v20 = vmax.f32 %v677_v30, 0.0 }
 0x21b   :  { %v763_v34 = vmax.f32 %v679_v32, 0.0 }
 0x21c   :  { %v764_v15 = vmax.f32 %v681_v36, 0.0 }
 0x21d   :  { %v801_v18 = vpack.c.bf16 %v763_v34, %v761_v37 }
 0x21e   :  { %v802_v38 = vpack.c.bf16 %v764_v15, %v762_v20  ;;  %v684_v39 = vpop.f32.mrb[68].mxu1 }
 0x21f   :  { %v685_v40 = vadd.f32 %v684_v39, %v1707_v43  ;;  %v686_v41 = vpop.f32.mrb[69].mxu1 }
 0x220   :  { %v687_v42 = vadd.f32 %v686_v41, %v1709_v44  ;;  %v688_v45 = vpop.f32.mrb[70].mxu1  ;;  %1072 = vmatprep.mubr.bf16.mxu0 %v802_v38 }
 0x221   :  { %v689_v46 = vadd.f32 %v688_v45, %v1707_v43  ;;  %v690_v47 = vpop.f32.mrb[71].mxu1  ;;  %1073 = vmatmul.mubr.bf16.gmra.mrb[64].mxu0 %v801_v18  ;;  %v765_v33 = vmax.f32 %v685_v40, 0.0 }
 0x222   :  { %v691_v48 = vadd.f32 %v690_v47, %v1709_v44  ;;  %v766_v50 = vmax.f32 %v687_v42, 0.0 }
 0x223   :  { %v767_v49 = vmax.f32 %v689_v46, 0.0 }
 0x224   :  { %v768_v51 = vmax.f32 %v691_v48, 0.0 }
 0x225   :  { %v803_v52 = vpack.c.bf16 %v767_v49, %v765_v33 }
 0x226   :  { %v804_v53 = vpack.c.bf16 %v768_v51, %v766_v50  ;;  %v694_v54 = vpop.f32.mrb[72].mxu1 }
 0x227   :  { %v695_v55 = vadd.f32 %v694_v54, %v1707_v43  ;;  %v696_v56 = vpop.f32.mrb[73].mxu1 }
 0x228   :  { %v697_v57 = vadd.f32 %v696_v56, %v1709_v44  ;;  %v698_v58 = vpop.f32.mrb[74].mxu1  ;;  %1080 = vmatprep.mubr.bf16.mxu0 %v804_v53 }
 0x229   :  { %v699_v59 = vadd.f32 %v698_v58, %v1707_v43  ;;  %v700_v60 = vpop.f32.mrb[75].mxu1  ;;  %1081 = vmatmul.mubr.bf16.gmra.mrb[68].mxu0 %v803_v52  ;;  %v769_v62 = vmax.f32 %v695_v55, 0.0 }
 0x22a   :  { %v701_v61 = vadd.f32 %v700_v60, %v1709_v44  ;;  %v770_v0 = vmax.f32 %v697_v57, 0.0 }
 0x22b   :  { %v771_v63 = vmax.f32 %v699_v59, 0.0 }
 0x22c   :  { %v772_v1 = vmax.f32 %v701_v61, 0.0 }
 0x22d   :  { %v805_v2 = vpack.c.bf16 %v771_v63, %v769_v62 }
 0x22e   :  { %v806_v3 = vpack.c.bf16 %v772_v1, %v770_v0  ;;  %v704_v4 = vpop.f32.mrb[76].mxu1 }
 0x22f   :  { %v705_v5 = vadd.f32 %v704_v4, %v1707_v43  ;;  %v706_v6 = vpop.f32.mrb[77].mxu1 }
 0x230   :  { %v707_v7 = vadd.f32 %v706_v6, %v1709_v44  ;;  %v708_v8 = vpop.f32.mrb[78].mxu1  ;;  %1088 = vmatprep.mubr.bf16.mxu0 %v806_v3 }
 0x231   :  { %v709_v9 = vadd.f32 %v708_v8, %v1707_v43  ;;  %v710_v10 = vpop.f32.mrb[79].mxu1  ;;  %1089 = vmatmul.mubr.bf16.gmra.mrb[72].mxu0 %v805_v2  ;;  %v773_v12 = vmax.f32 %v705_v5, 0.0 }
 0x232   :  { %v711_v11 = vadd.f32 %v710_v10, %v1709_v44  ;;  %v774_v14 = vmax.f32 %v707_v7, 0.0 }
 0x233   :  { %v775_v13 = vmax.f32 %v709_v9, 0.0 }
 0x234   :  { %v776_v16 = vmax.f32 %v711_v11, 0.0 }
 0x235   :  { %v807_v17 = vpack.c.bf16 %v775_v13, %v773_v12 }
 0x236   :  { %v808_v19 = vpack.c.bf16 %v776_v16, %v774_v14 }
 0x238   :  { %1096 = vmatprep.mubr.bf16.mxu0 %v808_v19 }
 0x239   :  { %1097 = vmatmul.mubr.bf16.gmra.mrb[76].mxu0 %v807_v17 }
 0x294   :  { %v1242_v21 = vpop.f32.mrb[16].mxu0 }
 0x295   :  { %v1243_v23 = vpop.f32.mrb[17].mxu0 }
 0x296   :  { %v1244_v43 = vadd.f32 %v1243_v23, %v1242_v21  ;;  %v1245_v24 = vpop.f32.mrb[18].mxu0 }
 0x297   :  { %v1246_v25 = vpop.f32.mrb[19].mxu0 }
 0x298   :  { %v979_v44 = vadd.f32 %v1244_v43, %v1778_v22  ;;  %v1247_v26 = vadd.f32 %v1246_v25, %v1245_v24 }
 0x29a   :  { %1106 = vst.msk [vmem:[%s1947_s7] sm:$0xff] %vm1105_vm1, %v979_v44  ;;  %v982_v27 = vadd.f32 %v1247_v26, %v1778_v22 }
 0x29c   :  { %1107 = vst.msk [vmem:[%s1947_s7 + $0x8] sm:$0xff] %vm1105_vm1, %v982_v27  ;;  %v1248_v28 = vpop.f32.mrb[20].mxu0 }
 0x29d   :  { %v1249_v29 = vpop.f32.mrb[21].mxu0 }
 0x29e   :  { %v1250_v30 = vadd.f32 %v1249_v29, %v1248_v28  ;;  %v1251_v31 = vpop.f32.mrb[22].mxu0 }
 0x29f   :  { %v1252_v32 = vpop.f32.mrb[23].mxu0 }
 0x2a0   :  { %v987_v35 = vadd.f32 %v1250_v30, %v1778_v22  ;;  %v1253_v36 = vadd.f32 %v1252_v32, %v1251_v31 }
 0x2a2   :  { %1108 = vst.msk [vmem:[%s1947_s7 + $0x10] sm:$0xff] %vm1105_vm1, %v987_v35  ;;  %v990_v37 = vadd.f32 %v1253_v36, %v1778_v22 }
 0x2a4   :  { %1109 = vst.msk [vmem:[%s1947_s7 + $0x18] sm:$0xff] %vm1105_vm1, %v990_v37  ;;  %v1254_v34 = vpop.f32.mrb[24].mxu0 }
 0x2a5   :  { %v1255_v20 = vpop.f32.mrb[25].mxu0 }
 0x2a6   :  { %v1256_v15 = vadd.f32 %v1255_v20, %v1254_v34  ;;  %v1257_v18 = vpop.f32.mrb[26].mxu0 }
 0x2a7   :  { %v1258_v38 = vpop.f32.mrb[27].mxu0 }
 0x2a8   :  { %v995_v39 = vadd.f32 %v1256_v15, %v1778_v22  ;;  %v1259_v40 = vadd.f32 %v1258_v38, %v1257_v18 }
 0x2aa   :  { %1110 = vst.msk [vmem:[%s1947_s7 + $0x20] sm:$0xff] %vm1105_vm1, %v995_v39  ;;  %v998_v41 = vadd.f32 %v1259_v40, %v1778_v22 }
 0x2ac   :  { %1111 = vst.msk [vmem:[%s1947_s7 + $0x28] sm:$0xff] %vm1105_vm1, %v998_v41  ;;  %v1260_v42 = vpop.f32.mrb[28].mxu0 }
 0x2ad   :  { %v1261_v45 = vpop.f32.mrb[29].mxu0 }
 0x2ae   :  { %v1262_v46 = vadd.f32 %v1261_v45, %v1260_v42  ;;  %v1263_v47 = vpop.f32.mrb[30].mxu0 }
 0x2af   :  { %v1264_v48 = vpop.f32.mrb[31].mxu0 }
 0x2b0   :  { %v1003_v33 = vadd.f32 %v1262_v46, %v1778_v22  ;;  %v1265_v49 = vadd.f32 %v1264_v48, %v1263_v47 }
 0x2b2   :  { %1112 = vst.msk [vmem:[%s1947_s7 + $0x30] sm:$0xff] %vm1105_vm1, %v1003_v33  ;;  %v1006_v50 = vadd.f32 %v1265_v49, %v1778_v22 }
 0x2b4   :  { %1113 = vst.msk [vmem:[%s1947_s7 + $0x38] sm:$0xff] %vm1105_vm1, %v1006_v50  ;;  %v1266_v51 = vpop.f32.mrb[32].mxu0 }
 0x2b5   :  { %v1267_v52 = vpop.f32.mrb[33].mxu0 }
 0x2b6   :  { %v1268_v53 = vadd.f32 %v1267_v52, %v1266_v51  ;;  %v1269_v54 = vpop.f32.mrb[34].mxu0 }
 0x2b7   :  { %v1270_v55 = vpop.f32.mrb[35].mxu0 }
 0x2b8   :  { %v1011_v56 = vadd.f32 %v1268_v53, %v1778_v22  ;;  %v1271_v57 = vadd.f32 %v1270_v55, %v1269_v54 }
 0x2ba   :  { %1114 = vst.msk [vmem:[%s1947_s7 + $0x40] sm:$0xff] %vm1105_vm1, %v1011_v56  ;;  %v1014_v58 = vadd.f32 %v1271_v57, %v1778_v22 }
 0x2bc   :  { %1115 = vst.msk [vmem:[%s1947_s7 + $0x48] sm:$0xff] %vm1105_vm1, %v1014_v58  ;;  %v1272_v59 = vpop.f32.mrb[36].mxu0 }
 0x2bd   :  { %v1273_v60 = vpop.f32.mrb[37].mxu0 }
 0x2be   :  { %v1274_v61 = vadd.f32 %v1273_v60, %v1272_v59  ;;  %v1275_v62 = vpop.f32.mrb[38].mxu0 }
 0x2bf   :  { %v1276_v63 = vpop.f32.mrb[39].mxu0 }
 0x2c0   :  { %v1019_v0 = vadd.f32 %v1274_v61, %v1778_v22  ;;  %v1277_v1 = vadd.f32 %v1276_v63, %v1275_v62 }
 0x2c2   :  { %1116 = vst.msk [vmem:[%s1947_s7 + $0x50] sm:$0xff] %vm1105_vm1, %v1019_v0  ;;  %v1022_v2 = vadd.f32 %v1277_v1, %v1778_v22 }
 0x2c4   :  { %1117 = vst.msk [vmem:[%s1947_s7 + $0x58] sm:$0xff] %vm1105_vm1, %v1022_v2  ;;  %v1278_v3 = vpop.f32.mrb[40].mxu0 }
 0x2c5   :  { %v1279_v4 = vpop.f32.mrb[41].mxu0 }
 0x2c6   :  { %v1280_v5 = vadd.f32 %v1279_v4, %v1278_v3  ;;  %v1281_v6 = vpop.f32.mrb[42].mxu0 }
 0x2c7   :  { %v1282_v7 = vpop.f32.mrb[43].mxu0 }
 0x2c8   :  { %v1027_v8 = vadd.f32 %v1280_v5, %v1778_v22  ;;  %v1283_v9 = vadd.f32 %v1282_v7, %v1281_v6 }
 0x2ca   :  { %1118 = vst.msk [vmem:[%s1947_s7 + $0x60] sm:$0xff] %vm1105_vm1, %v1027_v8  ;;  %v1030_v10 = vadd.f32 %v1283_v9, %v1778_v22 }
 0x2cc   :  { %1119 = vst.msk [vmem:[%s1947_s7 + $0x68] sm:$0xff] %vm1105_vm1, %v1030_v10  ;;  %v1284_v11 = vpop.f32.mrb[44].mxu0 }
 0x2cd   :  { %v1285_v12 = vpop.f32.mrb[45].mxu0 }
 0x2ce   :  { %v1286_v13 = vadd.f32 %v1285_v12, %v1284_v11  ;;  %v1287_v14 = vpop.f32.mrb[46].mxu0 }
 0x2cf   :  { %v1288_v16 = vpop.f32.mrb[47].mxu0 }
 0x2d0   :  { %v1035_v17 = vadd.f32 %v1286_v13, %v1778_v22  ;;  %v1289_v19 = vadd.f32 %v1288_v16, %v1287_v14 }
 0x2d2   :  { %1120 = vst.msk [vmem:[%s1947_s7 + $0x70] sm:$0xff] %vm1105_vm1, %v1035_v17  ;;  %v1038_v21 = vadd.f32 %v1289_v19, %v1778_v22 }
 0x2d4   :  { %1121 = vst.msk [vmem:[%s1947_s7 + $0x78] sm:$0xff] %vm1105_vm1, %v1038_v21  ;;  %v1290_v23 = vpop.f32.mrb[48].mxu0 }
 0x2d5   :  { %v1291_v43 = vpop.f32.mrb[49].mxu0 }
 0x2d6   :  { %v1292_v24 = vadd.f32 %v1291_v43, %v1290_v23  ;;  %v1293_v25 = vpop.f32.mrb[50].mxu0 }
 0x2d7   :  { %v1294_v44 = vpop.f32.mrb[51].mxu0 }
 0x2d8   :  { %v1043_v26 = vadd.f32 %v1292_v24, %v1778_v22  ;;  %v1295_v27 = vadd.f32 %v1294_v44, %v1293_v25 }
 0x2da   :  { %1122 = vst.msk [vmem:[%s1947_s7 + $0x80] sm:$0xff] %vm1105_vm1, %v1043_v26  ;;  %v1046_v28 = vadd.f32 %v1295_v27, %v1778_v22 }
 0x2dc   :  { %1123 = vst.msk [vmem:[%s1947_s7 + $0x88] sm:$0xff] %vm1105_vm1, %v1046_v28  ;;  %v1296_v29 = vpop.f32.mrb[52].mxu0 }
 0x2dd   :  { %v1297_v30 = vpop.f32.mrb[53].mxu0 }
 0x2de   :  { %v1298_v31 = vadd.f32 %v1297_v30, %v1296_v29  ;;  %v1299_v32 = vpop.f32.mrb[54].mxu0 }
 0x2df   :  { %v1300_v35 = vpop.f32.mrb[55].mxu0 }
 0x2e0   :  { %v1051_v36 = vadd.f32 %v1298_v31, %v1778_v22  ;;  %v1301_v37 = vadd.f32 %v1300_v35, %v1299_v32 }
 0x2e2   :  { %1124 = vst.msk [vmem:[%s1947_s7 + $0x90] sm:$0xff] %vm1105_vm1, %v1051_v36  ;;  %v1054_v34 = vadd.f32 %v1301_v37, %v1778_v22 }
 0x2e4   :  { %1125 = vst.msk [vmem:[%s1947_s7 + $0x98] sm:$0xff] %vm1105_vm1, %v1054_v34  ;;  %v1302_v20 = vpop.f32.mrb[56].mxu0 }
 0x2e5   :  { %v1303_v15 = vpop.f32.mrb[57].mxu0 }
 0x2e6   :  { %v1304_v18 = vadd.f32 %v1303_v15, %v1302_v20  ;;  %v1305_v38 = vpop.f32.mrb[58].mxu0 }
 0x2e7   :  { %v1306_v39 = vpop.f32.mrb[59].mxu0 }
 0x2e8   :  { %v1059_v40 = vadd.f32 %v1304_v18, %v1778_v22  ;;  %v1307_v41 = vadd.f32 %v1306_v39, %v1305_v38 }
 0x2ea   :  { %1126 = vst.msk [vmem:[%s1947_s7 + $0xa0] sm:$0xff] %vm1105_vm1, %v1059_v40  ;;  %v1062_v42 = vadd.f32 %v1307_v41, %v1778_v22 }
 0x2ec   :  { %1127 = vst.msk [vmem:[%s1947_s7 + $0xa8] sm:$0xff] %vm1105_vm1, %v1062_v42  ;;  %v1308_v45 = vpop.f32.mrb[60].mxu0 }
 0x2ed   :  { %v1309_v46 = vpop.f32.mrb[61].mxu0 }
 0x2ee   :  { %v1310_v47 = vadd.f32 %v1309_v46, %v1308_v45  ;;  %v1311_v48 = vpop.f32.mrb[62].mxu0 }
 0x2ef   :  { %v1312_v33 = vpop.f32.mrb[63].mxu0 }
 0x2f0   :  { %v1067_v49 = vadd.f32 %v1310_v47, %v1778_v22  ;;  %v1313_v50 = vadd.f32 %v1312_v33, %v1311_v48 }
 0x2f2   :  { %1128 = vst.msk [vmem:[%s1947_s7 + $0xb0] sm:$0xff] %vm1105_vm1, %v1067_v49  ;;  %v1070_v51 = vadd.f32 %v1313_v50, %v1778_v22 }
 0x2f4   :  { %1129 = vst.msk [vmem:[%s1947_s7 + $0xb8] sm:$0xff] %vm1105_vm1, %v1070_v51  ;;  %v1314_v52 = vpop.f32.mrb[64].mxu0 }
 0x2f5   :  { %v1315_v53 = vpop.f32.mrb[65].mxu0 }
 0x2f6   :  { %v1316_v54 = vadd.f32 %v1315_v53, %v1314_v52  ;;  %v1317_v55 = vpop.f32.mrb[66].mxu0 }
 0x2f7   :  { %v1318_v56 = vpop.f32.mrb[67].mxu0 }
 0x2f8   :  { %v1075_v57 = vadd.f32 %v1316_v54, %v1778_v22  ;;  %v1319_v58 = vadd.f32 %v1318_v56, %v1317_v55 }
 0x2fa   :  { %1130 = vst.msk [vmem:[%s1947_s7 + $0xc0] sm:$0xff] %vm1105_vm1, %v1075_v57  ;;  %v1078_v59 = vadd.f32 %v1319_v58, %v1778_v22 }
 0x2fc   :  { %1131 = vst.msk [vmem:[%s1947_s7 + $0xc8] sm:$0xff] %vm1105_vm1, %v1078_v59  ;;  %v1320_v60 = vpop.f32.mrb[68].mxu0 }
 0x2fd   :  { %v1321_v61 = vpop.f32.mrb[69].mxu0 }
 0x2fe   :  { %v1322_v62 = vadd.f32 %v1321_v61, %v1320_v60  ;;  %v1323_v63 = vpop.f32.mrb[70].mxu0 }
 0x2ff   :  { %v1324_v0 = vpop.f32.mrb[71].mxu0 }
 0x300   :  { %v1083_v1 = vadd.f32 %v1322_v62, %v1778_v22  ;;  %v1325_v2 = vadd.f32 %v1324_v0, %v1323_v63 }
 0x302   :  { %1132 = vst.msk [vmem:[%s1947_s7 + $0xd0] sm:$0xff] %vm1105_vm1, %v1083_v1  ;;  %v1086_v3 = vadd.f32 %v1325_v2, %v1778_v22 }
 0x304   :  { %1133 = vst.msk [vmem:[%s1947_s7 + $0xd8] sm:$0xff] %vm1105_vm1, %v1086_v3  ;;  %v1326_v4 = vpop.f32.mrb[72].mxu0 }
 0x305   :  { %v1327_v5 = vpop.f32.mrb[73].mxu0 }
 0x306   :  { %v1328_v6 = vadd.f32 %v1327_v5, %v1326_v4  ;;  %v1329_v7 = vpop.f32.mrb[74].mxu0 }
 0x307   :  { %v1330_v8 = vpop.f32.mrb[75].mxu0 }
 0x308   :  { %v1091_v9 = vadd.f32 %v1328_v6, %v1778_v22  ;;  %v1331_v10 = vadd.f32 %v1330_v8, %v1329_v7 }
 0x30a   :  { %1134 = vst.msk [vmem:[%s1947_s7 + $0xe0] sm:$0xff] %vm1105_vm1, %v1091_v9  ;;  %v1094_v11 = vadd.f32 %v1331_v10, %v1778_v22 }
 0x30c   :  { %1135 = vst.msk [vmem:[%s1947_s7 + $0xe8] sm:$0xff] %vm1105_vm1, %v1094_v11  ;;  %v1332_v12 = vpop.f32.mrb[76].mxu0 }
 0x30d   :  { %v1333_v13 = vpop.f32.mrb[77].mxu0 }
 0x30e   :  { %v1334_v14 = vadd.f32 %v1333_v13, %v1332_v12  ;;  %v1335_v16 = vpop.f32.mrb[78].mxu0 }
 0x30f   :  { %v1336_v17 = vpop.f32.mrb[79].mxu0 }
 0x310   :  { %v1099_v19 = vadd.f32 %v1334_v14, %v1778_v22  ;;  %v1337_v21 = vadd.f32 %v1336_v17, %v1335_v16 }
 0x312   :  { %1136 = vst.msk [vmem:[%s1947_s7 + $0xf0] sm:$0xff] %vm1105_vm1, %v1099_v19  ;;  %v1102_v23 = vadd.f32 %v1337_v21, %v1778_v22 }
 0x314   :  { %1137 = vst.msk [vmem:[%s1947_s7 + $0xf8] sm:$0xff] %vm1105_vm1, %v1102_v23 }

</bundles_post_ra>
